<compile_context>
chip_gen: v6e
topology: v6e:2x2x1
jax: 0.10.0
libtpu: 0.0.40
codegen_flags: <defaults>
</compile_context>

<pallas_src>
import jax
import jax.numpy as jnp
from jax.experimental import pallas as pl
from jax.experimental.pallas import tpu as pltpu

WIN_SIZE = 11
WIN_SIGMA = 1.5
DATA_RANGE = 1.0
K1, K2 = 0.01, 0.03
C1 = (K1 * DATA_RANGE) ** 2
C2 = (K2 * DATA_RANGE) ** 2


def _gaussian_1d(size: int, sigma: float) -> jnp.ndarray:
    # Matches pytorch_msssim._fspecial_gauss_1d
    coords = jnp.arange(size, dtype=jnp.float32) - (size // 2)
    g = jnp.exp(-(coords ** 2) / (2.0 * sigma ** 2))
    return g / jnp.sum(g)


def _band_matrix(g: jnp.ndarray, size_in: int) -> jnp.ndarray:
    """(size_out, size_in) matrix B with B[i, i+k] = g[k]; B @ x == valid 1-D corr."""
    ws = g.shape[0]
    size_out = size_in - ws + 1
    rows = jnp.arange(size_out)[:, None]
    cols = jnp.arange(size_in)[None, :]
    k = cols - rows
    valid = (k >= 0) & (k < ws)
    return jnp.where(valid, g[jnp.clip(k, 0, ws - 1)], 0.0).astype(jnp.float32)


def _recip(x):
    # EUP approximate reciprocal + one Newton-Raphson refinement (cheap VPU).
    r = pl.reciprocal(x, approx=True)
    return r * (2.0 - x * r)


def _make_ssim_kernel(bwo_valid: int):
    def kernel(x_ref, y_ref, gh_ref, gwt_ref, o_ref):
        x = x_ref[0]              # (H, BW) f32 (B small images packed along lanes, or B=1)
        y = y_ref[0]              # (H, BW) f32
        gh = gh_ref[...]          # (Ho, H) f32 vertical band matrix
        gwt = gwt_ref[...]        # (BW, BWo_pad) f32 horizontal band matrix (lane-padded)

        # Separable valid Gaussian filter = two MXU dots; per-quantity loop keeps live
        # intermediates small.  f32 in / f32 acc to preserve the variance terms.
        def filt(img):
            t = jnp.dot(gh, img, preferred_element_type=jnp.float32)     # (Ho, BW)
            return jnp.dot(t, gwt, preferred_element_type=jnp.float32)   # (Ho, BWo_pad)

        mu1 = filt(x)
        mu2 = filt(y)
        exx = filt(x * x)
        eyy = filt(y * y)
        exy = filt(x * y)

        mu1_sq = mu1 * mu1
        mu2_sq = mu2 * mu2
        mu1_mu2 = mu1 * mu2
        sigma1_sq = exx - mu1_sq
        sigma2_sq = eyy - mu2_sq
        sigma12 = exy - mu1_mu2

        inv_l = _recip(mu1_sq + mu2_sq + C1)
        inv_cs = _recip(sigma1_sq + sigma2_sq + C2)
        ssim_map = (2.0 * mu1_mu2 + C1) * (2.0 * sigma12 + C2) * inv_l * inv_cs

        # Zero the lane-padding columns so the global sum in the epilogue is exact.
        if ssim_map.shape[1] != bwo_valid:
            lane = jax.lax.broadcasted_iota(jnp.int32, ssim_map.shape, 1)
            ssim_map = jnp.where(lane < bwo_valid, ssim_map, 0.0)

        # Per-column partial sums (cheap sublane reduce, lane-dense unmasked store);
        # the tiny cross-lane mean + (1 - ssim) * loss_weight epilogue runs in XLA.
        col = jnp.sum(ssim_map, axis=0, keepdims=True)                   # (1, BWo_pad)
        o_ref[...] = col[None, :, :]                                     # (1, 1, BWo_pad)

    return kernel


def _choose_pack_factor(nc: int, w: int) -> int:
    """How many images to pack along the lane axis per grid step."""
    if w >= 128:
        # Already lane-dense: packing would only add a wrapper transpose (extra HBM
        # round trip) and a wasteful block-diagonal horizontal matmul.
        return 1
    b = 1
    for cand in range(nc, 0, -1):
        if nc % cand:
            continue
        if cand * w > 256:               # bound block-diag MXU waste and B^2 VMEM growth
            continue
        if nc // cand < 2 and nc >= 2:   # keep >= 2 grid steps so v7x's 2nd TC isn't idle
            continue
        b = cand
        break
    return b


def ssim_loss(output, target, loss_weight=0.1):
    """output, target: (N, C, H, W) float32 in [0, 1]. Returns scalar loss."""
    n, c, h, w = output.shape
    nc = n * c
    ho, wo = h - WIN_SIZE + 1, w - WIN_SIZE + 1
    if ho <= 0 or wo <= 0:
        raise ValueError("spatial dims must be >= WIN_SIZE (11)")

    b = _choose_pack_factor(nc, w)
    num_blocks = nc // b
    bw, bwo = b * w, b * wo
    bwo_pad = ((bwo + 127) // 128) * 128   # lane-dense (unmasked) output stores

    # (N, C, H, W) -> (N*C, H, W); only small-W images get the lane-packing transpose.
    xf = output.astype(jnp.float32).reshape(nc, h, w)
    yf = target.astype(jnp.float32).reshape(nc, h, w)
    if b == 1:
        x, y = xf, yf
    else:
        def pack(img):
            img = img.reshape(num_blocks, b, h, w)
            return jnp.transpose(img, (0, 2, 1, 3)).reshape(num_blocks, h, bw)
        x, y = pack(xf), pack(yf)

    # Gaussian band matrices (f32).  Valid separable conv == two dense dots.
    g = _gaussian_1d(WIN_SIZE, WIN_SIGMA)
    gh = _band_matrix(g, h)                                   # (Ho, H)
    gw_t = _band_matrix(g, w).T                               # (W, Wo)
    if b == 1:
        gwt = gw_t
    else:
        # Block-diagonal over the (<= 256-lane) packed images keeps them independent.
        gwt = jnp.kron(jnp.eye(b, dtype=jnp.float32), gw_t)   # (BW, BWo)
    if bwo_pad != bwo:
        gwt = jnp.pad(gwt, ((0, 0), (0, bwo_pad - bwo)))      # zero-pad lanes to 128 mult.

    # Explicit per-step VMEM budget (bytes): inputs/outputs are double-buffered by
    # Pallas, constants are double-buffer allocated (but DMA'd once: constant
    # index_map), plus live per-quantity intermediates and elementwise temporaries.
    f32 = 4
    est = (
        2 * 2 * h * bw * f32               # x, y (double-buffered)
        + 2 * 1 * bwo_pad * f32            # output (double-buffered)
        + 2 * ho * h * f32                 # gh
        + 2 * bw * bwo_pad * f32           # gwt
        + 8 * ho * max(bw, bwo_pad) * f32  # mu1, mu2, exx, eyy, exy + dot temps
        + 2 * h * bw * f32                 # elementwise temporaries (x*x, x*y, ...)
    )
    vmem_limit = int(min(max(2 * est, 32 * 1024 * 1024), 64 * 1024 * 1024))

    partial = pl.pallas_call(
        _make_ssim_kernel(bwo),
        out_shape=jax.ShapeDtypeStruct((num_blocks, 1, bwo_pad), jnp.float32),
        grid_spec=pltpu.PrefetchScalarGridSpec(
            num_scalar_prefetch=0,
            grid=(num_blocks,),
            in_specs=[
                pl.BlockSpec((1, h, bw), lambda i: (i, 0, 0)),
                pl.BlockSpec((1, h, bw), lambda i: (i, 0, 0)),
                # Constant operands: index_map never changes -> DMA'd only once.
                pl.BlockSpec((ho, h), lambda i: (0, 0)),
                pl.BlockSpec((bw, bwo_pad), lambda i: (0, 0)),
            ],
            out_specs=pl.BlockSpec((1, 1, bwo_pad), lambda i: (i, 0, 0)),
        ),
        compiler_params=pltpu.CompilerParams(
            dimension_semantics=("parallel",),   # no cross-step carry -> megacore OK
            vmem_limit_bytes=vmem_limit,
        ),
    )(x, y, gh, gwt)

    # size_average=True: global mean over all (N*C, Ho, Wo) pixels (equal sizes);
    # padded lanes were zeroed in-kernel so a plain global sum is exact.
    ssim_val = jnp.sum(partial) / float(nc * ho * wo)
    return (1.0 - ssim_val) * loss_weight


if __name__ == "__main__":
    key = jax.random.PRNGKey(0)
    k1, k2 = jax.random.split(key)
    batch, channels, hw = 2, 4, 16
    output = jax.random.uniform(k1, (batch, channels, hw, hw), dtype=jnp.float32)
    target = jax.random.uniform(k2, (batch, channels, hw, hw), dtype=jnp.float32)

    loss = ssim_loss(output, target, loss_weight=0.1)
    jax.block_until_ready(loss)
    print("KERNEL_OK")
</pallas_src>

<mosaic_0001>
module attributes {stable_mosaic.version = 11 : i64} {
  func.func @kernel(%arg0: i32, %arg1: memref<1x16x64xf32, #tpu.memory_space<vmem>>, %arg2: memref<1x16x64xf32, #tpu.memory_space<vmem>>, %arg3: memref<6x16xf32, #tpu.memory_space<vmem>>, %arg4: memref<64x128xf32, #tpu.memory_space<vmem>>, %arg5: memref<1x1x128xf32, #tpu.memory_space<vmem>>) attributes {dimension_semantics = [#tpu.dimension_semantics<parallel>], iteration_bounds = array<i64: 2>, scalar_prefetch = 0 : i64, scratch_operands = 0 : i64, tpu.core_type = #tpu.core_type<tc>, window_params = [{transform_indices = @transform_0, window_bounds = array<i64: 1, 16, 64>}, {transform_indices = @transform_1, window_bounds = array<i64: 1, 16, 64>}, {pipeline_mode = #tpu.pipeline_mode<synchronous>, transform_indices = @transform_2, window_bounds = array<i64: 6, 16>}, {pipeline_mode = #tpu.pipeline_mode<synchronous>, transform_indices = @transform_3, window_bounds = array<i64: 64, 128>}, {transform_indices = @transform_4, window_bounds = array<i64: 1, 1, 128>}]} {
    %c0 = arith.constant 0 : index
    %c0_0 = arith.constant 0 : index
    %c0_1 = arith.constant 0 : index
    %0 = vector.load %arg1[%c0, %c0_0, %c0_1] : memref<1x16x64xf32, #tpu.memory_space<vmem>>, vector<1x16x64xf32>
    %1 = vector.shape_cast %0 : vector<1x16x64xf32> to vector<16x64xf32>
    %c0_2 = arith.constant 0 : index
    %c0_3 = arith.constant 0 : index
    %c0_4 = arith.constant 0 : index
    %2 = vector.load %arg2[%c0_2, %c0_3, %c0_4] : memref<1x16x64xf32, #tpu.memory_space<vmem>>, vector<1x16x64xf32>
    %3 = vector.shape_cast %2 : vector<1x16x64xf32> to vector<16x64xf32>
    %c0_5 = arith.constant 0 : index
    %c0_6 = arith.constant 0 : index
    %4 = vector.load %arg3[%c0_5, %c0_6] : memref<6x16xf32, #tpu.memory_space<vmem>>, vector<6x16xf32>
    %c0_7 = arith.constant 0 : index
    %c0_8 = arith.constant 0 : index
    %5 = vector.load %arg4[%c0_7, %c0_8] : memref<64x128xf32, #tpu.memory_space<vmem>>, vector<64x128xf32>
    %cst = arith.constant dense<0.000000e+00> : vector<6x64xf32>
    %6 = tpu.matmul %4, %1, %cst {dimension_numbers = #tpu.dot_dimension_numbers<[1], [0], [0], [1], [0, 0, 1, 1], [], []>} : vector<6x16xf32>, vector<16x64xf32>, vector<6x64xf32> -> vector<6x64xf32>
    %cst_9 = arith.constant dense<0.000000e+00> : vector<6x128xf32>
    %7 = tpu.matmul %6, %5, %cst_9 {dimension_numbers = #tpu.dot_dimension_numbers<[1], [0], [0], [1], [0, 0, 1, 1], [], []>} : vector<6x64xf32>, vector<64x128xf32>, vector<6x128xf32> -> vector<6x128xf32>
    %cst_10 = arith.constant dense<0.000000e+00> : vector<6x64xf32>
    %8 = tpu.matmul %4, %3, %cst_10 {dimension_numbers = #tpu.dot_dimension_numbers<[1], [0], [0], [1], [0, 0, 1, 1], [], []>} : vector<6x16xf32>, vector<16x64xf32>, vector<6x64xf32> -> vector<6x64xf32>
    %cst_11 = arith.constant dense<0.000000e+00> : vector<6x128xf32>
    %9 = tpu.matmul %8, %5, %cst_11 {dimension_numbers = #tpu.dot_dimension_numbers<[1], [0], [0], [1], [0, 0, 1, 1], [], []>} : vector<6x64xf32>, vector<64x128xf32>, vector<6x128xf32> -> vector<6x128xf32>
    %10 = arith.mulf %1, %1 : vector<16x64xf32>
    %cst_12 = arith.constant dense<0.000000e+00> : vector<6x64xf32>
    %11 = tpu.matmul %4, %10, %cst_12 {dimension_numbers = #tpu.dot_dimension_numbers<[1], [0], [0], [1], [0, 0, 1, 1], [], []>} : vector<6x16xf32>, vector<16x64xf32>, vector<6x64xf32> -> vector<6x64xf32>
    %cst_13 = arith.constant dense<0.000000e+00> : vector<6x128xf32>
    %12 = tpu.matmul %11, %5, %cst_13 {dimension_numbers = #tpu.dot_dimension_numbers<[1], [0], [0], [1], [0, 0, 1, 1], [], []>} : vector<6x64xf32>, vector<64x128xf32>, vector<6x128xf32> -> vector<6x128xf32>
    %13 = arith.mulf %3, %3 : vector<16x64xf32>
    %cst_14 = arith.constant dense<0.000000e+00> : vector<6x64xf32>
    %14 = tpu.matmul %4, %13, %cst_14 {dimension_numbers = #tpu.dot_dimension_numbers<[1], [0], [0], [1], [0, 0, 1, 1], [], []>} : vector<6x16xf32>, vector<16x64xf32>, vector<6x64xf32> -> vector<6x64xf32>
    %cst_15 = arith.constant dense<0.000000e+00> : vector<6x128xf32>
    %15 = tpu.matmul %14, %5, %cst_15 {dimension_numbers = #tpu.dot_dimension_numbers<[1], [0], [0], [1], [0, 0, 1, 1], [], []>} : vector<6x64xf32>, vector<64x128xf32>, vector<6x128xf32> -> vector<6x128xf32>
    %16 = arith.mulf %1, %3 : vector<16x64xf32>
    %cst_16 = arith.constant dense<0.000000e+00> : vector<6x64xf32>
    %17 = tpu.matmul %4, %16, %cst_16 {dimension_numbers = #tpu.dot_dimension_numbers<[1], [0], [0], [1], [0, 0, 1, 1], [], []>} : vector<6x16xf32>, vector<16x64xf32>, vector<6x64xf32> -> vector<6x64xf32>
    %cst_17 = arith.constant dense<0.000000e+00> : vector<6x128xf32>
    %18 = tpu.matmul %17, %5, %cst_17 {dimension_numbers = #tpu.dot_dimension_numbers<[1], [0], [0], [1], [0, 0, 1, 1], [], []>} : vector<6x64xf32>, vector<64x128xf32>, vector<6x128xf32> -> vector<6x128xf32>
    %19 = arith.mulf %7, %7 : vector<6x128xf32>
    %20 = arith.mulf %9, %9 : vector<6x128xf32>
    %21 = arith.mulf %7, %9 : vector<6x128xf32>
    %22 = arith.subf %12, %19 : vector<6x128xf32>
    %23 = arith.subf %15, %20 : vector<6x128xf32>
    %24 = arith.subf %18, %21 : vector<6x128xf32>
    %25 = arith.addf %19, %20 : vector<6x128xf32>
    %cst_18 = arith.constant 9.99999974E-5 : f32
    %26 = vector.broadcast %cst_18 : f32 to vector<6x128xf32>
    %27 = arith.addf %25, %26 : vector<6x128xf32>
    %28 = tpu.reciprocal %27 {approx = true} : vector<6x128xf32> -> vector<6x128xf32>
    %29 = arith.mulf %27, %28 : vector<6x128xf32>
    %cst_19 = arith.constant 2.000000e+00 : f32
    %30 = vector.broadcast %cst_19 : f32 to vector<6x128xf32>
    %31 = arith.subf %30, %29 : vector<6x128xf32>
    %32 = arith.mulf %28, %31 : vector<6x128xf32>
    %33 = arith.addf %22, %23 : vector<6x128xf32>
    %cst_20 = arith.constant 8.99999984E-4 : f32
    %34 = vector.broadcast %cst_20 : f32 to vector<6x128xf32>
    %35 = arith.addf %33, %34 : vector<6x128xf32>
    %36 = tpu.reciprocal %35 {approx = true} : vector<6x128xf32> -> vector<6x128xf32>
    %37 = arith.mulf %35, %36 : vector<6x128xf32>
    %cst_21 = arith.constant 2.000000e+00 : f32
    %38 = vector.broadcast %cst_21 : f32 to vector<6x128xf32>
    %39 = arith.subf %38, %37 : vector<6x128xf32>
    %40 = arith.mulf %36, %39 : vector<6x128xf32>
    %cst_22 = arith.constant 2.000000e+00 : f32
    %41 = vector.broadcast %cst_22 : f32 to vector<6x128xf32>
    %42 = arith.mulf %41, %21 : vector<6x128xf32>
    %cst_23 = arith.constant 9.99999974E-5 : f32
    %43 = vector.broadcast %cst_23 : f32 to vector<6x128xf32>
    %44 = arith.addf %42, %43 : vector<6x128xf32>
    %cst_24 = arith.constant 2.000000e+00 : f32
    %45 = vector.broadcast %cst_24 : f32 to vector<6x128xf32>
    %46 = arith.mulf %45, %24 : vector<6x128xf32>
    %cst_25 = arith.constant 8.99999984E-4 : f32
    %47 = vector.broadcast %cst_25 : f32 to vector<6x128xf32>
    %48 = arith.addf %46, %47 : vector<6x128xf32>
    %49 = arith.mulf %44, %48 : vector<6x128xf32>
    %50 = arith.mulf %49, %32 : vector<6x128xf32>
    %51 = arith.mulf %50, %40 : vector<6x128xf32>
    %52 = tpu.iota {dimensions = array<i32: 1>} : vector<6x128xi32>
    %c24_i32 = arith.constant 24 : i32
    %53 = vector.broadcast %c24_i32 : i32 to vector<6x128xi32>
    %54 = arith.cmpi slt, %52, %53 : vector<6x128xi32>
    %cst_26 = arith.constant 0.000000e+00 : f32
    %55 = vector.broadcast %cst_26 : f32 to vector<6x128xf32>
    %56 = arith.select %54, %51, %55 : vector<6x128xi1>, vector<6x128xf32>
    %cst_27 = arith.constant dense<0.000000e+00> : vector<128xf32>
    %57 = vector.multi_reduction <add>, %56, %cst_27 [0] : vector<6x128xf32> to vector<128xf32>
    %58 = vector.shape_cast %57 : vector<128xf32> to vector<1x128xf32>
    %59 = vector.shape_cast %58 : vector<1x128xf32> to vector<1x1x128xf32>
    %c0_28 = arith.constant 0 : index
    %c0_29 = arith.constant 0 : index
    %c0_30 = arith.constant 0 : index
    %60 = vector.load %arg5[%c0_28, %c0_29, %c0_30] : memref<1x1x128xf32, #tpu.memory_space<vmem>>, vector<1x1x128xf32>
    tpu.vector_store %arg5[%c0_28, %c0_29, %c0_30], %59 {strides = array<i32>} : memref<1x1x128xf32, #tpu.memory_space<vmem>>, vector<1x1x128xf32>,
    return
  }
  func.func @transform_0(%arg0: i32) -> (i32, i32, i32) {
    %c0_i32 = arith.constant 0 : i32
    %c0_i32_0 = arith.constant 0 : i32
    %c0_i32_1 = arith.constant 0 : i32
    return %arg0, %c0_i32, %c0_i32_0 : i32, i32, i32
  }
  func.func @transform_1(%arg0: i32) -> (i32, i32, i32) {
    %c0_i32 = arith.constant 0 : i32
    %c0_i32_0 = arith.constant 0 : i32
    %c0_i32_1 = arith.constant 0 : i32
    return %arg0, %c0_i32, %c0_i32_0 : i32, i32, i32
  }
  func.func @transform_2(%arg0: i32) -> (i32, i32) {
    %c0_i32 = arith.constant 0 : i32
    %c0_i32_0 = arith.constant 0 : i32
    %c0_i32_1 = arith.constant 0 : i32
    return %c0_i32, %c0_i32_0 : i32, i32
  }
  func.func @transform_3(%arg0: i32) -> (i32, i32) {
    %c0_i32 = arith.constant 0 : i32
    %c0_i32_0 = arith.constant 0 : i32
    %c0_i32_1 = arith.constant 0 : i32
    return %c0_i32, %c0_i32_0 : i32, i32
  }
  func.func @transform_4(%arg0: i32) -> (i32, i32, i32) {
    %c0_i32 = arith.constant 0 : i32
    %c0_i32_0 = arith.constant 0 : i32
    %c0_i32_1 = arith.constant 0 : i32
    return %arg0, %c0_i32, %c0_i32_0 : i32, i32, i32
  }
}

</mosaic_0001>

<bundles_post_ra>
// kernel: tpu_custom_call.1
= control target key start
LH: loop header
LB: loop body
LE: loop exit
PB: predicated region body
PF: predicated region fallthrough
CT: control target
= control target key end

     0   :  { %s2115_s0 = inlined_call_operand.hbm [shape: f32[2,16,64], index: 0, kind: input, shape index: {}]   ;;  %s2116_s1 = inlined_call_operand.hbm [shape: f32[2,16,64], index: 1, kind: input, shape index: {}]   ;;  %s2117_s2 = inlined_call_operand.hbm [shape: f32[6,16], index: 2, kind: input, shape index: {}]   ;;  %s2118_s3 = inlined_call_operand.hbm [shape: f32[64,128], index: 3, kind: input, shape index: {}]   ;;  %s2119_s4 = inlined_call_operand.hbm [shape: f32[2,1,128], index: 4, kind: output, shape index: {}]  }
   0x1   :  { %2124 = sst [smem:[#allocation16_spill]] %s2115_s0 }
   0x2   :  { %9 = vsyncpa [#allocation3], 0 }
   0x3   :  { %11 = vsyncpa [#allocation3 + $0x1], 0 }
   0x4   :  { %12 = vsyncpa [#allocation6], 0 }
   0x5   :  { %14 = vsyncpa [#allocation6 + $0x1], 0 }
   0x6   :  { %15 = vsyncpa [#allocation9], 0 }
   0x7   :  { %16 = vsyncpa [#allocation4], 0 }
   0x8   :  { %18 = vsyncpa [#allocation4 + $0x1], 0  ;;  %s1701_s15 = smov 0   ;;  %s1703_s16 = smov 0  }
   0x9   :  { %s1705_s17 = smov 0   ;;  %s1707_s18 = smov 0  }
   0xa LB: > { %s1722_s19 = sadd.s32 4294967295, %s1665_s18   ;;  %s1180_s20 = sadd.s32 4294967294, %s1665_s18   ;;  %s1665_s18 = sphi %s1707_s18, %s2146_s18   ;;  %s1661_s17 = sphi %s1705_s17, %s2145_s17   ;;  %s1657_s16 = sphi %s1703_s16, %s2144_s16   ;;  %s1653_s15 = sphi %s1701_s15, %s2143_s15  }
   0xb   : > { %s1726_s21 = sadd.s32 1, %s1665_s18   ;;  %s31_s22 = sadd.s32 1, %s1661_s17 }
   0xc   : > { %s28_s23 = ssub.s32 %s1665_s18, %s1726_s21  ;;  %p38_p0 = scmp.ne.s32.totalorder %s1661_s17, %s1657_s16 }
   0xd   : > { %p29_p1 = scmp.eq.s32.totalorder %s28_s23, 0  ;;  %p39_p2 = scmp.eq.s32.totalorder %s1665_s18, 0 }
   0xe   : > { %p44_p3 = scmp.ne.s32.totalorder %s1657_s16, %s1653_s15  ;;  %p2120_p4 = scmp.eq.s32.totalorder %s1722_s19, 0 }
   0xf   : > { %s1738_s24 = scalar_select %p29_p1, %s1661_s17, %s31_s22  }
  0x10   : > { %p1740_p5 = por %p39_p2, %p38_p0  ;;  %p1746_p6 = por %p2120_p4, %p44_p3 }
  0x11   : > { %p136_p7 = scmp.eq.s32.totalorder %s1722_s19, 1  ;;  %p142_p8 = scmp.eq.s32.totalorder %s1180_s20, 1 }
  0x12   : > { %s2126_s26 = scalar_select %p1746_p6, 1, 0 }
  0x13   : > { %p1181_p9 = scmp.ge.s32.totalorder %s1665_s18, 1  ;;  %p149_p10 = scmp.lt.s32.totalorder %s1665_s18, 3 }
  0x14   : > { %p1753_p11 = por %p136_p7, %p38_p0  ;;  %p1757_p12 = por %p142_p8, %p44_p3 }
  0x15   : > { %p1761_p13 = pnand %p1181_p9, %p149_p10  ;;  %s1667_s30 = smov [#allocation7]  }
  0x16   : > { %s2127_s27 = scalar_select %p1753_p11, 1, 0 }
  0x17   : > { %s2128_s28 = scalar_select %p1757_p12, 1, 0 }
  0x18   : > { %p1415_p2 = pneg %p1761_p13  ;;  %s162_s5 = sshll.u32 %s1667_s30, 4  ;;  %s163_s5 = int_to_ptr.vmem [resolvable:$true] %s162_s5 }
  0x19   : > { %p1435_p4 = scmp.lt.s32.totalorder %s1665_s18, 2  ;;  %p2130_p0 = scmp.eq.s32.totalorder %s1722_s19, 0 }
  0x1a   : > { %s1668_s8 = smov [#allocation8]   ;;  %s1492_s10 = scalar_lea.vmem %s163_s5, 128 }
  0x1b   : > { %p1771_p7 = pnand %p1415_p2, %p2130_p0  ;;  %p1777_p3 = pnand %p1435_p4, %p1740_p5 }
  0x1c   : > { %s172_s9 = sshll.u32 %s1668_s8, 4  ;;  %p1493_p9 = scmp.ne.s32.totalorder %s163_s5, %s1492_s10  ;;  %s173_s9 = int_to_ptr.vmem [resolvable:$true] %s172_s9 }
  0x1d   : > { %p1483_p8 = pneg %p1771_p7  ;;  %p1500_p0 = scmp.lt.s32.totalorder %s163_s5, %s163_s5 }
  0x1e   : > { %p1501_p1 = scmp.lt.s32.totalorder %s1492_s10, %s1492_s10 }
  0x1f   : > { %p1495_p10 = pnand %p1493_p9, %p1483_p8 }
  0x20   : > { %p1502_p12 = por %p1501_p1, %p1500_p0 }
  0x21   : > { %p1496_p2 = pneg %p1495_p10 }
  0x23   : > { %p1503_p11 = pnand %p1502_p12, %p1496_p2 }
  0x25   : > { %1506 = shalt.err (!%p1503_p11)
}
  0x26   : > { %1418 = dma.hbm_to_vmem [thread:$0]  (!%p1771_p7), %s2117_s2, 128, %s163_s5, [#allocation6]  }
  0x27   : > { %s186_s13 = sand.u32 1, %s1661_s17   ;;  %s1518_s14 = scalar_lea.vmem %s173_s9, 1024 }
  0x28   : > { %p1519_p4 = scmp.ne.s32.totalorder %s173_s9, %s1518_s14  ;;  %p1526_p10 = scmp.lt.s32.totalorder %s173_s9, %s173_s9 }
  0x29   : > { %p1527_p6 = scmp.lt.s32.totalorder %s1518_s14, %s1518_s14 }
  0x2a   : > { %p1521_p5 = pnand %p1519_p4, %p1483_p8 }
  0x2b   : > { %p1528_p1 = por %p1527_p6, %p1526_p10 }
  0x2c   : > { %p1522_p9 = pneg %p1521_p5 }
  0x2e   : > { %p1529_p12 = pnand %p1528_p1, %p1522_p9 }
  0x30   : > { %1532 = shalt.err (!%p1529_p12)
}
  0x31   : > { %s1669_s20 = smov 128   ;;  %s1670_s22 = smov 8  }
  0x32   : > { %1421 = dma.hbm_to_vmem [thread:$0]  (!%p1771_p7), %s2118_s3, 1024, %s173_s9, [#allocation9], %s1669_s20, %s1669_s20, %s1670_s22  }
  0x33   : > { %s1803_s30 = sshll.u32 %s186_s13, 4  ;;  %s2123_s5 = sshll.u32 %s1665_s18, 8 }
  0x34   : > { %s2133_s0 = sld [smem:[#allocation16_spill]]  ;;  %s190_s6 = scalar_lea.vmem [#allocation2], %s1803_s30 }
  0x35   : > { %s197_s12 = sshll.u32 %s190_s6, 4  ;;  %s1816_s14 = scalar_lea.sflag [#allocation3], %s186_s13  ;;  %s1814_s12 = int_to_ptr.vmem [resolvable:$true] %s197_s12 }
  0x36   : > { %p1535_p11 = pneg %p1777_p3 }
  0x3a   : > { %s1811_s11 = scalar_lea.hbm %s2133_s0, %s2123_s5  ;;  %s1538_s8 = scalar_lea.hbm %s2133_s0, 512 }
  0x3b   : > { %s1533_s9 = scalar_lea.hbm %s1811_s11, 256  ;;  %p1539_p2 = scmp.lt.s32.totalorder %s1811_s11, %s2133_s0 }
  0x3c   : > { %p1534_p6 = scmp.ne.s32.totalorder %s1811_s11, %s1533_s9  ;;  %p1540_p0 = scmp.lt.s32.totalorder %s1538_s8, %s1533_s9 }
  0x3e   : > { %p1536_p7 = pnand %p1535_p11, %p1534_p6  ;;  %p1541_p4 = por %p1540_p0, %p1539_p2 }
  0x40   : > { %p1537_p8 = pneg %p1536_p7 }
  0x42   : > { %p1542_p5 = pnand %p1541_p4, %p1537_p8 }
  0x44   : > { %1545 = shalt.err (!%p1542_p5)
}
  0x45   : > { %s1546_s13 = scalar_lea.vmem %s1814_s12, 256  ;;  %s1671_s6 = smov [#allocation2]  }
  0x46   : > { %p1547_p9 = scmp.ne.s32.totalorder %s1814_s12, %s1546_s13  ;;  %s1551_s23 = sshll.u32 %s1671_s6, 4  ;;  %s1552_s23 = int_to_ptr.vmem [resolvable:$false] %s1551_s23 }
  0x47   : > { %s1553_s25 = scalar_lea.vmem %s1552_s23, 512  ;;  %p1554_p12 = scmp.lt.s32.totalorder %s1814_s12, %s1552_s23 }
  0x48   : > { %p1549_p10 = pnand %p1547_p9, %p1535_p11  ;;  %p1555_p6 = scmp.lt.s32.totalorder %s1553_s25, %s1546_s13 }
  0x4a   : > { %p1550_p1 = pneg %p1549_p10  ;;  %p1556_p7 = por %p1555_p6, %p1554_p12 }
  0x4c   : > { %p1557_p2 = pnand %p1556_p7, %p1550_p1 }
  0x4e   : > { %1560 = shalt.err (!%p1557_p2)
}
  0x4f   : > { %1425 = dma.hbm_to_vmem [thread:$0]  (!%p1777_p3), %s1811_s11, 256, %s1814_s12, %s1816_s14, %s1669_s20, %s1669_s20, %s1670_s22  }
  0x50   : > { %s2134_s5 = sshll.u32 %s1665_s18, 8  ;;  %s211_s13 = scalar_lea.vmem [#allocation5], %s1803_s30 }
  0x51   : > { %s1851_s10 = scalar_lea.hbm %s2116_s1, %s2134_s5  ;;  %s218_s6 = sshll.u32 %s211_s13, 4  ;;  %s1854_s6 = int_to_ptr.vmem [resolvable:$true] %s218_s6 }
  0x52   : > { %s207_s23 = sand.u32 1, %s1665_s18   ;;  %s1561_s0 = scalar_lea.hbm %s1851_s10, 256 }
  0x53   : > { %s208_s25 = scalar_lea.sflag [#allocation6], %s207_s23  ;;  %p1562_p8 = scmp.ne.s32.totalorder %s1851_s10, %s1561_s0 }
  0x54   : > { %s1566_s14 = scalar_lea.hbm %s2116_s1, 512  ;;  %p1567_p5 = scmp.lt.s32.totalorder %s1851_s10, %s2116_s1 }
  0x55   : > { %p1564_p0 = pnand %p1562_p8, %p1535_p11  ;;  %p1568_p9 = scmp.lt.s32.totalorder %s1566_s14, %s1561_s0 }
  0x57   : > { %p1565_p4 = pneg %p1564_p0  ;;  %p1569_p10 = por %p1568_p9, %p1567_p5 }
  0x59   : > { %p1570_p1 = pnand %p1569_p10, %p1565_p4 }
  0x5b   : > { %1573 = shalt.err (!%p1570_p1)
}
  0x5c   : > { %s1574_s30 = scalar_lea.vmem %s1854_s6, 256  ;;  %s1672_s8 = smov [#allocation5]  }
  0x5d   : > { %p1575_p12 = scmp.ne.s32.totalorder %s1854_s6, %s1574_s30  ;;  %s1579_s13 = sshll.u32 %s1672_s8, 4  ;;  %s1580_s13 = int_to_ptr.vmem [resolvable:$false] %s1579_s13 }
  0x5e   : > { %s1581_s23 = scalar_lea.vmem %s1580_s13, 512  ;;  %p1582_p2 = scmp.lt.s32.totalorder %s1854_s6, %s1580_s13 }
  0x5f   : > { %p1577_p6 = pnand %p1575_p12, %p1535_p11  ;;  %p1583_p8 = scmp.lt.s32.totalorder %s1581_s23, %s1574_s30 }
  0x61   : > { %p1578_p7 = pneg %p1577_p6  ;;  %p1584_p0 = por %p1583_p8, %p1582_p2 }
  0x63   : > { %p1585_p5 = pnand %p1584_p0, %p1578_p7 }
  0x65   : > { %1588 = shalt.err (!%p1585_p5)
}
  0x66   : > { %1428 = dma.hbm_to_vmem [thread:$0]  (!%p1777_p3), %s1851_s10, 256, %s1854_s6, %s208_s25, %s1669_s20, %s1669_s20, %s1670_s22  }
  0x67   : > { %230 = sbr.rel (%p1761_p13) target bundleno = 948 (0x3b4), region = 36  ;;  %s1885_s0 = sand.u32 (!%p1761_p13), 1, %s1657_s16  }
  0x68   : > { %s1192_s11 = sshll.u32 (!%p1761_p13), %s1885_s0, 4  ;;  %s233_s12 = scalar_lea.sflag (!%p1761_p13), [#allocation3], %s1885_s0 }
  0x69   : > { %s236_s14 = scalar_lea.vmem (!%p1761_p13), [#allocation2], %s1192_s11  ;;  %p2135_p11 = scmp.ne.s32.totalorder (!%p1761_p13), %s2126_s26, 0 }
  0x6c   : > { %1632 = dma.done.wait (%p2135_p11), %s233_s12, 256  }
  0x6d   : > { %1634 = vsyncadd (%p2135_p11), %s233_s12, 4294967040  ;;  %s241_s7 = sand.u32 1, %s1722_s19   ;;  %s245_s29 = scalar_lea.vmem [#allocation5], %s1192_s11 }
  0x6e   : > { %s242_s20 = scalar_lea.sflag [#allocation6], %s241_s7 }
  0x6f   : > { %1636 = dma.done.wait (%p2135_p11), %s242_s20, 256  }
  0x70   : > { %1638 = vsyncadd (%p2135_p11), %s242_s20, 4294967040  ;;  %p2136_p13 = scmp.eq.s32.totalorder %s1722_s19, 0 }
  0x72   : > { %1640 = dma.done.wait (%p2136_p13), [#allocation6], 128   ;;  %p2137_p3 = pmov %p2136_p13 }
  0x74   : > { %1642 = vsyncadd (%p2137_p3), [#allocation6], 4294967168  ;;  %p2138_p4 = pmov %p2137_p3 }
  0x75   : > { %p2139_p9 = pmov %p2137_p3 }
  0x76   : > { %1644 = dma.done.wait (%p2138_p4), [#allocation9], 1024  }
  0x77   : > { %1646 = vsyncadd (%p2139_p9), [#allocation9], 4294966272  ;;  %v1673_v0 = vmov 0.0   ;;  %vm1674_vm0 = vmmov 0   ;;  %v1912_v1 = vld [vmem:[%s236_s14 + $0x8] sm:$0xff]  ;;  %v1914_v2 = vld [vmem:[%s236_s14] sm:$0xff]  ;;  %v1046_v54 = vlaneseq }
  0x78   : > { %1271 = vmatprep.subr.mxu0 %v1673_v0  ;;  %1275 = vmatprep.mubr.msk.f32.mxu0 %vm1674_vm0, %v1673_v0  ;;  %v1916_v3 = vld [vmem:[#allocation7] sm:$0x3f]  ;;  %vm295_vm1 = vcmask 130048   ;;  %v1919_v4 = vld [vmem:[%s245_s29 + $0x8] sm:$0xff]  ;;  %v1946_v10 = vld [vmem:[#allocation8 + $0x28] sm:$0xff]  ;;  %vm369_vm2 = vcmask 523264   ;;  %v587_v17 = vmul.f32 %v1912_v1, %v1912_v1  ;;  %v586_v19 = vmul.f32 %v1914_v2, %v1914_v2 }
  0x79   : > { %1278 = vmatprep.subr.mxu1 %v1673_v0  ;;  %1294 = vmatprep.mubr.msk.f32.mxu1 %vm1674_vm0, %v1673_v0  ;;  %v1921_v5 = vld [vmem:[%s245_s29] sm:$0xff]  ;;  %v1928_v7 = vmul.f32 %v1919_v4, %v1912_v1  ;;  %v1939_v9 = vld [vmem:[#allocation8 + $0x30] sm:$0xff]  ;;  %v1953_v11 = vld [vmem:[#allocation8 + $0x20] sm:$0xff]  ;;  %v732_v21 = vmul.f32 %v1919_v4, %v1919_v4  ;;  %v1047_v61 = vand.u32 127, %v1046_v54  ;;  %vm1050_vm4 = vcmask 1045504   ;;  %s1206_s26 = sshll.u32 %s1722_s19, 4 }
  0x7a   : > { %1272 = vmatpush3.msra.mxu0 %v1912_v1  ;;  %v1923_v6 = vld [vmem:[#allocation8 + $0x38] sm:$0xff]  ;;  %v1932_v8 = vmul.f32 %v1921_v5, %v1914_v2  ;;  %v1965_v13 = vld [vmem:[#allocation8 + $0x10] sm:$0xff]  ;;  %v1971_v14 = vld [vmem:[#allocation8 + $0x8] sm:$0xff]  ;;  %v731_v23 = vmul.f32 %v1921_v5, %v1921_v5  ;;  %s281_s22 = scalar_lea.vmem [#allocation10], %s1885_s0  ;;  %s1070_s5 = scalar_lea.hbm %s2119_s4, %s1206_s26 }
  0x7b   : > { %1273 = vmatprep.subr.mxu0 %v1673_v0  ;;  %1279 = vmatpush3.msra.mxu1 %v1923_v6  ;;  %v1959_v12 = vld [vmem:[#allocation8 + $0x18] sm:$0xff]  ;;  %v1988_v15 = vld [vmem:[#allocation8] sm:$0xff]  ;;  %vm1048_vm3 = vcmp.lt.s32.totalorder %v1047_v61, 24  ;;  %s1072_s10 = sshll.u32 %s281_s22, 4  ;;  %s1060_s9 = scalar_lea.sflag [#allocation4], %s1885_s0  ;;  %s1073_s10 = int_to_ptr.vmem [resolvable:$true] %s1072_s10 }
  0x7c   : > { %1274 = vmatpush3.msra.mxu0 %v1914_v2  ;;  %1280 = vmatprep.subr.mxu1 %v1673_v0  ;;  %s1589_s30 = scalar_lea.vmem %s1073_s10, 16  ;;  %p2140_p1 = scmp.ne.s32.totalorder %s2127_s27, 0 }
  0x7d   : > { %1276 = vmatmul.mubr.msk.f32.vlgmr.msra.gmra.mxu0 %vm295_vm1, %v1916_v3  ;;  %1297 = vmatprep.subr.mxu0 %v1673_v0  ;;  %p1590_p10 = scmp.ne.s32.totalorder %s1073_s10, %s1589_s30  ;;  %s1675_s8 = smov [#allocation10]  }
  0x7e   : > { %1298 = vmatpush3.msra.mxu0 %v1919_v4  ;;  %1301 = vmatprep.mubr.msk.f32.mxu0 %vm1674_vm0, %v1673_v0  ;;  %s1593_s13 = sshll.u32 %s1675_s8, 4  ;;  %s1594_s13 = int_to_ptr.vmem [resolvable:$false] %s1593_s13 }
  0x7f   : > { %1299 = vmatprep.subr.mxu0 %v1673_v0  ;;  %1281 = vmatpush3.msra.mxu1 %v1939_v9  ;;  %p1591_p12 = pnand %p1590_p10, %p2140_p1  ;;  %s1595_s19 = scalar_lea.vmem %s1594_s13, 32 }
  0x80   : > { %1300 = vmatpush3.msra.mxu0 %v1921_v5  ;;  %1282 = vmatprep.subr.mxu1 %v1673_v0  ;;  %p1596_p7 = scmp.lt.s32.totalorder %s1073_s10, %s1594_s13  ;;  %p1597_p2 = scmp.lt.s32.totalorder %s1595_s19, %s1589_s30 }
  0x81   : > { %1302 = vmatmul.mubr.msk.f32.vlgmr.msra.gmra.mxu0 %vm295_vm1, %v1916_v3  ;;  %1304 = vmatprep.subr.mxu0 %v1673_v0  ;;  %p1592_p6 = pneg %p1591_p12 }
  0x82   : > { %1283 = vmatpush3.msra.mxu1 %v1946_v10  ;;  %1305 = vmatpush3.msra.mxu0 %v1923_v6  ;;  %p1598_p8 = por %p1597_p2, %p1596_p7 }
  0x83   : > { %1284 = vmatprep.subr.mxu1 %v1673_v0  ;;  %1306 = vmatprep.subr.mxu0 %v1673_v0 }
  0x84   : > { %1285 = vmatpush3.msra.mxu1 %v1953_v11  ;;  %1307 = vmatpush3.msra.mxu0 %v1939_v9  ;;  %p1599_p0 = pnand %p1598_p8, %p1592_p6 }
  0x85   : > { %1286 = vmatprep.subr.mxu1 %v1673_v0  ;;  %1308 = vmatprep.subr.mxu0 %v1673_v0 }
  0x86   : > { %1287 = vmatpush3.msra.mxu1 %v1959_v12  ;;  %1309 = vmatpush3.msra.mxu0 %v1946_v10 }
  0x87   : > { %1288 = vmatprep.subr.mxu1 %v1673_v0  ;;  %1310 = vmatprep.subr.mxu0 %v1673_v0 }
  0x88   : > { %1289 = vmatpush3.msra.mxu1 %v1965_v13  ;;  %1311 = vmatpush3.msra.mxu0 %v1953_v11 }
  0x89   : > { %1290 = vmatprep.subr.mxu1 %v1673_v0  ;;  %1312 = vmatprep.subr.mxu0 %v1673_v0 }
  0x8a   : > { %1291 = vmatpush3.msra.mxu1 %v1971_v14  ;;  %1313 = vmatpush3.msra.mxu0 %v1959_v12 }
  0x8b   : > { %1292 = vmatprep.subr.mxu1 %v1673_v0  ;;  %1314 = vmatprep.subr.mxu0 %v1673_v0 }
  0x8c   : > { %1320 = vmatprep.mubr.msk.f32.mxu0 %vm1674_vm0, %v1673_v0  ;;  %1315 = vmatpush3.msra.mxu0 %v1965_v13 }
  0x8d   : > { %1316 = vmatprep.subr.mxu0 %v1673_v0  ;;  %1293 = vmatpush3.msra.mxu1 %v1988_v15 }
  0x8e   : > { %1317 = vmatpush3.msra.mxu0 %v1971_v14  ;;  %1330 = vmatprep.subr.mxu1 %v1673_v0 }
  0x8f   : > { %1318 = vmatprep.subr.mxu0 %v1673_v0 }
  0x90   : > { %1319 = vmatpush3.msra.mxu0 %v1988_v15 }
  0x91   : > { %1323 = vmatprep.subr.mxu0 %v1673_v0 }
 0x13d   : > { %v365_v16 = vpop.f32.mrf.mxu0 }
 0x13e   : > { %1295 = vmatmul.mubr.msk.f32.vlgmr.msra.gmra.mxu1 %vm369_vm2, %v365_v16 }
 0x13f   : > { %v1277_v18 = vpop.f32.mrf.mxu0  ;;  %1331 = vmatpush3.msra.mxu1 %v1923_v6  ;;  %1346 = vmatprep.mubr.msk.f32.mxu1 %vm1674_vm0, %v1673_v0 }
 0x140   : > { %1332 = vmatprep.subr.mxu1 %v1673_v0 }
 0x141   : > { %v509_v20 = vpop.f32.mrf.mxu0  ;;  %1333 = vmatpush3.msra.mxu1 %v1939_v9 }
 0x142   : > { %1321 = vmatmul.mubr.msk.f32.vlgmr.msra.gmra.mxu0 %vm369_vm2, %v509_v20  ;;  %1334 = vmatprep.subr.mxu1 %v1673_v0 }
 0x143   : > { %v1303_v22 = vpop.f32.mrf.mxu0  ;;  %1324 = vmatpush3.msra.mxu0 %v587_v17  ;;  %1327 = vmatprep.mubr.msk.f32.mxu0 %vm1674_vm0, %v1673_v0 }
 0x144   : > { %1325 = vmatprep.subr.mxu0 %v1673_v0  ;;  %1335 = vmatpush3.msra.mxu1 %v1946_v10 }
 0x145   : > { %1326 = vmatpush3.msra.mxu0 %v586_v19  ;;  %1336 = vmatprep.subr.mxu1 %v1673_v0 }
 0x146   : > { %1328 = vmatmul.mubr.msk.f32.vlgmr.msra.gmra.mxu0 %vm295_vm1, %v1916_v3  ;;  %1349 = vmatprep.subr.mxu0 %v1673_v0 }
 0x147   : > { %1350 = vmatpush3.msra.mxu0 %v732_v21  ;;  %1353 = vmatprep.mubr.msk.f32.mxu0 %vm1674_vm0, %v1673_v0 }
 0x148   : > { %1351 = vmatprep.subr.mxu0 %v1673_v0  ;;  %1337 = vmatpush3.msra.mxu1 %v1953_v11 }
 0x149   : > { %1352 = vmatpush3.msra.mxu0 %v731_v23  ;;  %1338 = vmatprep.subr.mxu1 %v1673_v0 }
 0x14a   : > { %1354 = vmatmul.mubr.msk.f32.vlgmr.msra.gmra.mxu0 %vm295_vm1, %v1916_v3  ;;  %1356 = vmatprep.subr.mxu0 %v1673_v0 }
 0x14b   : > { %1357 = vmatpush3.msra.mxu0 %v1923_v6  ;;  %1339 = vmatpush3.msra.mxu1 %v1959_v12 }
 0x14c   : > { %1358 = vmatprep.subr.mxu0 %v1673_v0  ;;  %1340 = vmatprep.subr.mxu1 %v1673_v0 }
 0x14d   : > { %1359 = vmatpush3.msra.mxu0 %v1939_v9  ;;  %1341 = vmatpush3.msra.mxu1 %v1965_v13 }
 0x14e   : > { %1360 = vmatprep.subr.mxu0 %v1673_v0  ;;  %1342 = vmatprep.subr.mxu1 %v1673_v0 }
 0x14f   : > { %1361 = vmatpush3.msra.mxu0 %v1946_v10  ;;  %1343 = vmatpush3.msra.mxu1 %v1971_v14 }
 0x150   : > { %1362 = vmatprep.subr.mxu0 %v1673_v0  ;;  %1344 = vmatprep.subr.mxu1 %v1673_v0 }
 0x151   : > { %1363 = vmatpush3.msra.mxu0 %v1953_v11  ;;  %1345 = vmatpush3.msra.mxu1 %v1988_v15 }
 0x152   : > { %1364 = vmatprep.subr.mxu0 %v1673_v0  ;;  %1375 = vmatprep.subr.mxu1 %v1673_v0 }
 0x153   : > { %1365 = vmatpush3.msra.mxu0 %v1959_v12  ;;  %1372 = vmatprep.mubr.msk.f32.mxu0 %vm1674_vm0, %v1673_v0 }
 0x154   : > { %1366 = vmatprep.subr.mxu0 %v1673_v0 }
 0x155   : > { %1367 = vmatpush3.msra.mxu0 %v1965_v13 }
 0x156   : > { %1368 = vmatprep.subr.mxu0 %v1673_v0 }
 0x157   : > { %1369 = vmatpush3.msra.mxu0 %v1971_v14 }
 0x158   : > { %1370 = vmatprep.subr.mxu0 %v1673_v0 }
 0x159   : > { %1371 = vmatpush3.msra.mxu0 %v1988_v15 }
 0x1fe   : > { %v439_v24 = vpop.f32.mrf.mxu1 }
 0x1ff   : > { %v1021_v27 = vmul.f32 %v439_v24, %v439_v24 }
 0x200   : > { %v1296_v25 = vpop.f32.mrf.mxu1 }
 0x202   : > { %v582_v26 = vpop.f32.mrf.mxu0 }
 0x203   : > { %v1022_v28 = vmul.f32 %v582_v26, %v582_v26  ;;  %v1023_v29 = vmul.f32 %v582_v26, %v439_v24 }
 0x204   : > { %v1322_v30 = vpop.f32.mrf.mxu0 }
 0x205   : > { %v1027_v31 = vadd.f32 %v1022_v28, %v1021_v27  ;;  %v1039_v51 = vmul.f32 2.0, %v1023_v29 }
 0x206   : > { %v654_v32 = vpop.f32.mrf.mxu0 }
 0x207   : > { %1347 = vmatmul.mubr.msk.f32.vlgmr.msra.gmra.mxu1 %vm369_vm2, %v654_v32  ;;  %v1028_v45 = vadd.f32 0.0001, %v1027_v31  ;;  %v1040_v58 = vadd.f32 0.0001, %v1039_v51 }
 0x208   : > { %v1329_v33 = vpop.f32.mrf.mxu0  ;;  %1376 = vmatpush3.msra.mxu1 %v1928_v7  ;;  %1379 = vmatprep.mubr.msk.f32.mxu1 %vm1674_vm0, %v1673_v0 }
 0x209   : > { %1377 = vmatprep.subr.mxu1 %v1673_v0  ;;  %1477 = vrcp.f32 %v1028_v45 }
 0x20a   : > { %v799_v34 = vpop.f32.mrf.mxu0  ;;  %1378 = vmatpush3.msra.mxu1 %v1932_v8 }
 0x20b   : > { %1373 = vmatmul.mubr.msk.f32.vlgmr.msra.gmra.mxu0 %vm369_vm2, %v799_v34  ;;  %1380 = vmatmul.mubr.msk.f32.vlgmr.msra.gmra.mxu1 %vm295_vm1, %v1916_v3 }
 0x20c   : > { %v1355_v35 = vpop.f32.mrf.mxu0  ;;  %1382 = vmatprep.subr.mxu1 %v1673_v0  ;;  %1398 = vmatprep.mubr.msk.f32.mxu1 %vm1674_vm0, %v1673_v0 }
 0x20d   : > { %1383 = vmatpush3.msra.mxu1 %v1923_v6 }
 0x20e   : > { %1384 = vmatprep.subr.mxu1 %v1673_v0 }
 0x20f   : > { %1385 = vmatpush3.msra.mxu1 %v1939_v9 }
 0x210   : > { %1386 = vmatprep.subr.mxu1 %v1673_v0 }
 0x211   : > { %1387 = vmatpush3.msra.mxu1 %v1946_v10 }
 0x212   : > { %1388 = vmatprep.subr.mxu1 %v1673_v0 }
 0x213   : > { %1389 = vmatpush3.msra.mxu1 %v1953_v11 }
 0x214   : > { %1390 = vmatprep.subr.mxu1 %v1673_v0 }
 0x215   : > { %1391 = vmatpush3.msra.mxu1 %v1959_v12 }
 0x216   : > { %1392 = vmatprep.subr.mxu1 %v1673_v0  ;;  %v1478_v47 = vpop.eup %1477 }
 0x217   : > { %1393 = vmatpush3.msra.mxu1 %v1965_v13  ;;  %v1030_v49 = vmul.f32 %v1478_v47, %v1028_v45 }
 0x218   : > { %1394 = vmatprep.subr.mxu1 %v1673_v0 }
 0x219   : > { %1395 = vmatpush3.msra.mxu1 %v1971_v14  ;;  %v1031_v56 = vsub.f32 2.0, %v1030_v49 }
 0x21a   : > { %1396 = vmatprep.subr.mxu1 %v1673_v0 }
 0x21b   : > { %1397 = vmatpush3.msra.mxu1 %v1988_v15  ;;  %v1032_v62 = vmul.f32 %v1478_v47, %v1031_v56 }
 0x2c7   : > { %v727_v36 = vpop.f32.mrf.mxu1 }
 0x2c8   : > { %v1024_v37 = vsub.f32 %v727_v36, %v1021_v27 }
 0x2c9   : > { %v1348_v38 = vpop.f32.mrf.mxu1 }
 0x2cb   : > { %v872_v39 = vpop.f32.mrf.mxu0  ;;  %v944_v40 = vpop.f32.mrf.mxu1 }
 0x2cc   : > { %v1025_v41 = vsub.f32 %v872_v39, %v1022_v28  ;;  %1399 = vmatmul.mubr.msk.f32.vlgmr.msra.gmra.mxu1 %vm369_vm2, %v944_v40 }
 0x2cd   : > { %v1381_v42 = vpop.f32.mrf.mxu1  ;;  %v1374_v43 = vpop.f32.mrf.mxu0 }
 0x2ce   : > { %v1033_v44 = vadd.f32 %v1025_v41, %v1024_v37 }
 0x2d0   : > { %v1034_v46 = vadd.f32 0.0009, %v1033_v44 }
 0x2d2   : > { %1479 = vrcp.f32 %v1034_v46 }
 0x2df   : > { %v1480_v48 = vpop.eup %1479 }
 0x2e0   : > { %v1036_v52 = vmul.f32 %v1480_v48, %v1034_v46 }
 0x2e2   : > { %v1037_v59 = vsub.f32 2.0, %v1036_v52 }
 0x2e4   : > { %v1038_v0 = vmul.f32 %v1480_v48, %v1037_v59 }
 0x38c   : > { %v1017_v50 = vpop.f32.mrf.mxu1 }
 0x38d   : > { %v1026_v53 = vsub.f32 %v1017_v50, %v1023_v29 }
 0x38e   : > { %v1400_v55 = vpop.f32.mrf.mxu1 }
 0x38f   : > { %v1041_v57 = vmul.f32 2.0, %v1026_v53 }
 0x391   : > { %v1042_v60 = vadd.f32 0.0009, %v1041_v57 }
 0x393   : > { %v1043_v63 = vmul.f32 %v1042_v60, %v1040_v58 }
 0x395   : > { %v1044_v1 = vmul.f32 %v1043_v63, %v1032_v62 }
 0x397   : > { %v1045_v2 = vmul.f32 %v1044_v1, %v1038_v0 }
 0x399   : > { %v1049_v3 = vsel %vm1048_vm3, %v1045_v2, 0.0 }
 0x39a   : > { %v1051_v4 = vsel %vm1050_vm4, %v1049_v3, 0.0 }
 0x39b   : > { %v1052_v5 = vrot.slane %v1051_v4, 4 }
 0x39d   : > { %v1053_v6 = vadd.f32 %v1052_v5, %v1051_v4 }
 0x39f   : > { %v1054_v7 = vrot.slane %v1053_v6, 2 }
 0x3a1   : > { %v1055_v8 = vadd.f32 %v1054_v7, %v1053_v6 }
 0x3a3   : > { %v1056_v9 = vrot.slane %v1055_v8, 1 }
 0x3a5   : > { %v1057_v10 = vadd.f32 %v1056_v9, %v1055_v8 }
 0x3a7   : > { %1058 = vst [vmem:[%s281_s22] sm:$0x1] %v1057_v10 }
 0x3a8   : > { %1602 = shalt.err (!%p1599_p0)
}
 0x3a9   : > { %s1603_s23 = scalar_lea.hbm %s1070_s5, 16  ;;  %s1607_s12 = scalar_lea.hbm %s2119_s4, 32 }
 0x3aa   : > { %p1604_p5 = scmp.ne.s32.totalorder %s1070_s5, %s1603_s23  ;;  %p1608_p3 = scmp.lt.s32.totalorder %s1070_s5, %s2119_s4 }
 0x3ab   : > { %p1609_p4 = scmp.lt.s32.totalorder %s1607_s12, %s1603_s23 }
 0x3ac   : > { %p1605_p11 = pnand %p1604_p5, %p2140_p1 }
 0x3ad   : > { %p1610_p9 = por %p1609_p4, %p1608_p3 }
 0x3ae   : > { %p1606_p13 = pneg %p1605_p11 }
 0x3b0   : > { %p1611_p10 = pnand %p1610_p9, %p1606_p13 }
 0x3b2   : > { %1614 = shalt.err (!%p1611_p10)
}
 0x3b3   : > { %1413 = dma.vmem_to_hbm [thread:$0]  (%p2140_p1), %s1073_s10, 16, %s1070_s5, %s1060_s9  }
 0x3b4 PF: > { %s1084_s20 = sand.u32 1, %s1653_s15   ;;  %p2141_p12 = scmp.ne.s32.totalorder %s2128_s28, 0 }
 0x3b5   : > { %p2142_p6 = scmp.ge.s32.totalorder %s1665_s18, 2  ;;  %s1085_s29 = scalar_lea.sflag [#allocation4], %s1084_s20 }
 0x3b7   : > { %p1430_p7 = pnand %p2142_p6, %p2141_p12 }
 0x3b9   : > { %p1431_p2 = pneg %p1430_p7 }
 0x3bb   : > { %1648 = dma.done.wait (%p1431_p2), %s1085_s29, 16  }
 0x3bc   : > { %1650 = vsyncadd (%p1431_p2), %s1085_s29, 4294967280  ;;  %p21_p8 = scmp.ge.s32.totalorder %s1726_s21, 4   ;;  %s2143_s15 = smov %s1657_s16 }
 0x3bd   : > { %s2144_s16 = smov %s1661_s17  ;;  %s2145_s17 = smov %s1738_s24 }
 0x3be   : > { %s2146_s18 = smov %s1726_s21  ;;  %23 = sbr.rel (!%p21_p8) target bundleno = 10 (0xa), region = 102 }
 0x3c3   :  { %1089 = vsyncpa [#allocation3], 1 }
 0x3c4   :  { %1091 = vsyncpa [#allocation3 + $0x1], 1 }
 0x3c5   :  { %1092 = vsyncpa [#allocation6], 1 }
 0x3c6   :  { %1094 = vsyncpa [#allocation6 + $0x1], 1 }
 0x3c7   :  { %1095 = vsyncpa [#allocation9], 1 }
 0x3c8   :  { %1096 = vsyncpa [#allocation4], 1 }
 0x3c9   :  { %1098 = vsyncpa [#allocation4 + $0x1], 1 }

</bundles_post_ra>
